<compile_context>
chip_gen: v7x
topology: tpu7x:2x2x1
jax: 0.10.0
libtpu: 0.0.40
codegen_flags: <defaults>
</compile_context>

<pallas_src>
import numpy as np
import jax
import jax.numpy as jnp
from jax.experimental import pallas as pl
from jax.experimental.pallas import tpu as pltpu

# ---------------- small synthetic config ----------------
B = 4          # batch
T = 8          # label sequence length (labels: (B, T)); model emits T-1 steps
TM = T - 1
V = 128        # vocab size (lane-dense, multiple of 128)
H = 32         # hidden size
DFC = 32       # fc_feats dim
DATT = 32      # att_feats dim
NATT = 16      # number of attention regions
KD_WEIGHT = 0.5

TM_TILE = 16   # rows per grid step (bf16 sublane-pair aligned)


def _round_up(x, m):
    return (x + m - 1) // m * m


# ---------------- fused Pallas kernel: head matmul + log_softmax + loss sums ----------------
def fused_loss_kernel(h_ref, w_ref, lab_ref, msk_ref, out_ref, acc_ref):
    i = pl.program_id(0)

    @pl.when(i == 0)
    def _init():
        acc_ref[0] = jnp.float32(0.0)
        acc_ref[1] = jnp.float32(0.0)
        acc_ref[2] = jnp.float32(0.0)
        acc_ref[3] = jnp.float32(0.0)

    # (tm, H) @ (H, 2V) on the MXU: bf16 operands, f32 accumulation. One matmul for
    # both heads (student logits in lanes [:V], teacher logits in lanes [V:]).
    logits = jnp.dot(h_ref[...], w_ref[...], preferred_element_type=jnp.float32)

    # student log-softmax
    zs = logits[:, :V]
    zs = zs - jnp.max(zs, axis=-1, keepdims=True)
    s_sum = jnp.sum(jnp.exp(zs), axis=-1, keepdims=True)
    s = zs - jnp.log(s_sum)                                  # (tm, V) student log-probs

    # teacher log-softmax; reuse exp(zt) for the teacher probabilities (no 2nd exp pass)
    zt = logits[:, V:]
    zt = zt - jnp.max(zt, axis=-1, keepdims=True)
    et = jnp.exp(zt)
    t_sum = jnp.sum(et, axis=-1, keepdims=True)
    t = zt - jnp.log(t_sum)                                  # (tm, V) teacher log-probs
    pt = et / t_sum                                          # (tm, V) teacher probs = exp(t)

    lab = lab_ref[...]                                       # (tm, 1) int32 targets
    m = msk_ref[...]                                         # (tm, 1) f32 mask

    # gather via one-hot compare along the vocab (lane) axis
    col = jax.lax.broadcasted_iota(jnp.int32, s.shape, 1)
    onehot = (col == lab).astype(jnp.float32)
    nll = -jnp.sum(s * onehot, axis=-1, keepdims=True)       # (tm, 1)

    sel = (m != 0.0).astype(jnp.float32)                     # .bool() row selection
    kl_row = jnp.sum(pt * (t - s), axis=-1, keepdims=True)   # (tm, 1)

    acc_ref[0] += jnp.sum(nll * m)        # LanguageModelCriterion numerator
    acc_ref[1] += jnp.sum(m)              # LanguageModelCriterion denominator
    acc_ref[2] += jnp.sum(kl_row * sel)   # KL sum over selected rows
    acc_ref[3] += jnp.sum(sel)            # number of selected rows (batchmean)

    @pl.when(i == pl.num_programs(0) - 1)
    def _finalize():
        out_ref[0] = acc_ref[0]
        out_ref[1] = acc_ref[1]
        out_ref[2] = acc_ref[2]
        out_ref[3] = acc_ref[3]


def fused_loss_sums(h_bf16, w_cat_bf16, labels_flat, mask_flat):
    m_pad = h_bf16.shape[0]
    assert m_pad % TM_TILE == 0
    grid = (m_pad // TM_TILE,)
    return pl.pallas_call(
        fused_loss_kernel,
        out_shape=jax.ShapeDtypeStruct((4,), jnp.float32),
        grid_spec=pltpu.PrefetchScalarGridSpec(
            num_scalar_prefetch=0,
            grid=grid,
            in_specs=[
                pl.BlockSpec((TM_TILE, H), lambda i: (i, 0)),      # hidden tile
                pl.BlockSpec((H, 2 * V), lambda i: (0, 0)),        # resident [Ws|Wt] head
                pl.BlockSpec((TM_TILE, 1), lambda i: (i, 0)),      # labels tile
                pl.BlockSpec((TM_TILE, 1), lambda i: (i, 0)),      # mask tile
            ],
            out_specs=pl.BlockSpec(memory_space=pltpu.MemorySpace.SMEM),
            scratch_shapes=[pltpu.SMEM((4,), jnp.float32)],
        ),
        compiler_params=pltpu.CompilerParams(
            dimension_semantics=("arbitrary",),   # M axis carries the scalar accumulation
        ),
    )(h_bf16, w_cat_bf16, labels_flat, mask_flat)


# ---------------- synthetic student/teacher trunk (plain-JAX glue) ----------------
def make_params(key):
    ks = jax.random.split(key, 5)
    return {
        "Wfc":  jax.random.normal(ks[0], (DFC, H), jnp.float32) * 0.1,
        "Watt": jax.random.normal(ks[1], (DATT, H), jnp.float32) * 0.1,
        "Emb":  jax.random.normal(ks[2], (V, H), jnp.float32) * 0.1,
        "Ws":   jax.random.normal(ks[3], (H, V), jnp.float32) * 0.2,  # student head
        "Wt":   jax.random.normal(ks[4], (H, V), jnp.float32) * 0.2,  # teacher head
    }


def trunk_hidden(params, fc_feats, att_feats, labels, att_masks):
    emb = params["Emb"][labels[:, :-1]]                                   # (B, TM, H)
    fc_h = fc_feats @ params["Wfc"]                                       # (B, H)
    att_pool = (att_feats * att_masks[..., None]).sum(1) / att_masks.sum(
        1, keepdims=True)                                                 # (B, DATT)
    att_h = att_pool @ params["Watt"]                                     # (B, H)
    h = jnp.tanh(emb + (fc_h + att_h)[:, None, :])                        # (B, TM, H)
    return h.reshape(labels.shape[0] * (labels.shape[1] - 1), H)


# ---------------- LossWrapper.forward (sc_flag=False path) ----------------
def loss_wrapper_forward(params, fc_feats, att_feats, labels, masks, att_masks):
    h = trunk_hidden(params, fc_feats, att_feats, labels, att_masks)      # (M, H)
    m_real = h.shape[0]
    m_pad = _round_up(max(m_real, TM_TILE), TM_TILE)

    # concatenated head; teacher half under stop_gradient (mirrors torch.no_grad()).
    w_cat = jnp.concatenate(
        [params["Ws"], jax.lax.stop_gradient(params["Wt"])], axis=1)      # (H, 2V)

    # bf16 MXU operands; padded rows are exact zeros with mask=0 -> contribute 0.
    h_bf16 = jnp.pad(h, ((0, m_pad - m_real), (0, 0))).astype(jnp.bfloat16)
    w_bf16 = w_cat.astype(jnp.bfloat16)

    labels_flat = jnp.pad(labels[:, 1:].reshape(-1, 1).astype(jnp.int32),
                          ((0, m_pad - m_real), (0, 0)))                  # padded label = 0
    mask_flat = jnp.pad(masks[:, 1:].reshape(-1, 1).astype(jnp.float32),
                        ((0, m_pad - m_real), (0, 0)))                    # padded mask  = 0

    sums = fused_loss_sums(h_bf16, w_bf16, labels_flat, mask_flat)
    # guard 0/0 (all-zero-mask batch); masks are binary so this never changes valid cases
    loss1 = sums[0] / jnp.maximum(sums[1], 1.0)
    loss2 = sums[2] / jnp.maximum(sums[3], 1.0)
    loss = loss1 + KD_WEIGHT * loss2
    return {"loss": loss}, h_bf16, w_bf16


# ---------------- reference (numpy, mirrors the PyTorch module) ----------------
def reference_loss(h_bf16, w_bf16, labels, masks):
    h = np.asarray(h_bf16.astype(jnp.float32), dtype=np.float64)          # (M_pad, H)
    w = np.asarray(w_bf16.astype(jnp.float32), dtype=np.float64)          # (H, 2V)
    logits = h @ w

    def logsm(x):
        x = x - x.max(-1, keepdims=True)
        return x - np.log(np.exp(x).sum(-1, keepdims=True))

    s = logsm(logits[:, :V])
    t = logsm(logits[:, V:])
    lab = np.asarray(labels)[:, 1:].reshape(-1)
    msk = np.asarray(masks)[:, 1:].reshape(-1).astype(np.float64)
    m_real = lab.shape[0]
    s, t = s[:m_real], t[:m_real]

    nll = -s[np.arange(m_real), lab]
    loss1 = (nll * msk).sum() / msk.sum()
    sel = msk != 0
    s_sel, t_sel = s[sel], t[sel]
    loss2 = (np.exp(t_sel) * (t_sel - s_sel)).sum() / s_sel.shape[0]
    return loss1 + KD_WEIGHT * loss2


if __name__ == "__main__":
    key = jax.random.PRNGKey(0)
    kp, k1, k2, k3 = jax.random.split(key, 4)
    params = make_params(kp)

    fc_feats = jax.random.normal(k1, (B, DFC), jnp.float32)
    att_feats = jax.random.normal(k2, (B, NATT, DATT), jnp.float32)
    labels = jax.random.randint(k3, (B, T), 1, V).at[:, 0].set(0)         # BOS = 0
    lengths = jnp.array([7, 5, 8, 4])
    masks = (jnp.arange(T)[None, :] < lengths[:, None]).astype(jnp.float32)
    att_masks = jnp.ones((B, NATT), jnp.float32)

    out, h_bf16, w_bf16 = loss_wrapper_forward(
        params, fc_feats, att_feats, labels, masks, att_masks)
    loss = jax.block_until_ready(out["loss"])

    ref = reference_loss(h_bf16, w_bf16, labels, masks)
    assert np.isfinite(float(loss))
    np.testing.assert_allclose(float(loss), float(ref), rtol=1e-3, atol=1e-3)
    print("KERNEL_OK")
</pallas_src>

<mosaic_0001>
module attributes {stable_mosaic.version = 11 : i64} {
  func.func @fused_loss_kernel(%arg0: i32, %arg1: memref<16x32xbf16, #tpu.memory_space<vmem>>, %arg2: memref<32x256xbf16, #tpu.memory_space<vmem>>, %arg3: memref<16x1xi32, #tpu.memory_space<vmem>>, %arg4: memref<16x1xf32, #tpu.memory_space<vmem>>, %arg5: memref<4xf32, #tpu.memory_space<smem>>, %arg6: memref<4xf32, #tpu.memory_space<smem>>) attributes {dimension_semantics = [#tpu.dimension_semantics<arbitrary>], iteration_bounds = array<i64: 2>, scalar_prefetch = 0 : i64, scratch_operands = 1 : i64, tpu.core_type = #tpu.core_type<tc>, window_params = [{transform_indices = @transform_0, window_bounds = array<i64: 16, 32>}, {pipeline_mode = #tpu.pipeline_mode<synchronous>, transform_indices = @transform_1, window_bounds = array<i64: 32, 256>}, {transform_indices = @transform_2, window_bounds = array<i64: 16, 1>}, {transform_indices = @transform_3, window_bounds = array<i64: 16, 1>}, {transform_indices = @transform_4, window_bounds = array<i64: 4>}]} {
    %c0_i32 = arith.constant 0 : i32
    %0 = arith.cmpi eq, %arg0, %c0_i32 : i32
    %1 = arith.extui %0 : i1 to i32
    %c0_i32_0 = arith.constant 0 : i32
    %2 = arith.cmpi ne, %1, %c0_i32_0 : i32
    scf.if %2 {
      %cst_26 = arith.constant 0.000000e+00 : f32
      %c0_27 = arith.constant 0 : index
      %83 = memref.load %arg6[%c0_27] : memref<4xf32, #tpu.memory_space<smem>>
      memref.store %cst_26, %arg6[%c0_27] : memref<4xf32, #tpu.memory_space<smem>>
      %cst_28 = arith.constant 0.000000e+00 : f32
      %c1_29 = arith.constant 1 : index
      %84 = memref.load %arg6[%c1_29] : memref<4xf32, #tpu.memory_space<smem>>
      memref.store %cst_28, %arg6[%c1_29] : memref<4xf32, #tpu.memory_space<smem>>
      %cst_30 = arith.constant 0.000000e+00 : f32
      %c2_31 = arith.constant 2 : index
      %85 = memref.load %arg6[%c2_31] : memref<4xf32, #tpu.memory_space<smem>>
      memref.store %cst_30, %arg6[%c2_31] : memref<4xf32, #tpu.memory_space<smem>>
      %cst_32 = arith.constant 0.000000e+00 : f32
      %c3_33 = arith.constant 3 : index
      %86 = memref.load %arg6[%c3_33] : memref<4xf32, #tpu.memory_space<smem>>
      memref.store %cst_32, %arg6[%c3_33] : memref<4xf32, #tpu.memory_space<smem>>
    } else {
    }
    %c0 = arith.constant 0 : index
    %c0_1 = arith.constant 0 : index
    %3 = vector.load %arg1[%c0, %c0_1] : memref<16x32xbf16, #tpu.memory_space<vmem>>, vector<16x32xbf16>
    %c0_2 = arith.constant 0 : index
    %c0_3 = arith.constant 0 : index
    %4 = vector.load %arg2[%c0_2, %c0_3] : memref<32x256xbf16, #tpu.memory_space<vmem>>, vector<32x256xbf16>
    %cst = arith.constant dense<0.000000e+00> : vector<16x256xf32>
    %5 = tpu.matmul %3, %4, %cst {dimension_numbers = #tpu.dot_dimension_numbers<[1], [0], [0], [1], [0, 0, 1, 1], [], []>} : vector<16x32xbf16>, vector<32x256xbf16>, vector<16x256xf32> -> vector<16x256xf32>
    %6 = vector.extract_strided_slice %5 {offsets = [0, 0], sizes = [16, 128], strides = [1, 1]} : vector<16x256xf32> to vector<16x128xf32>
    %cst_4 = arith.constant dense<0xFF800000> : vector<16xf32>
    %7 = vector.multi_reduction <maximumf>, %6, %cst_4 [1] : vector<16x128xf32> to vector<16xf32>
    %8 = vector.shape_cast %7 : vector<16xf32> to vector<16x1xf32>
    %9 = vector.broadcast %8 : vector<16x1xf32> to vector<16x128xf32>
    %10 = arith.subf %6, %9 : vector<16x128xf32>
    %11 = math.exp %10 : vector<16x128xf32>
    %cst_5 = arith.constant dense<0.000000e+00> : vector<16xf32>
    %12 = vector.multi_reduction <add>, %11, %cst_5 [1] : vector<16x128xf32> to vector<16xf32>
    %13 = vector.shape_cast %12 : vector<16xf32> to vector<16x1xf32>
    %14 = math.log %13 : vector<16x1xf32>
    %15 = vector.broadcast %14 : vector<16x1xf32> to vector<16x128xf32>
    %16 = arith.subf %10, %15 : vector<16x128xf32>
    %17 = vector.extract_strided_slice %5 {offsets = [0, 128], sizes = [16, 128], strides = [1, 1]} : vector<16x256xf32> to vector<16x128xf32>
    %cst_6 = arith.constant dense<0xFF800000> : vector<16xf32>
    %18 = vector.multi_reduction <maximumf>, %17, %cst_6 [1] : vector<16x128xf32> to vector<16xf32>
    %19 = vector.shape_cast %18 : vector<16xf32> to vector<16x1xf32>
    %20 = vector.broadcast %19 : vector<16x1xf32> to vector<16x128xf32>
    %21 = arith.subf %17, %20 : vector<16x128xf32>
    %22 = math.exp %21 : vector<16x128xf32>
    %cst_7 = arith.constant dense<0.000000e+00> : vector<16xf32>
    %23 = vector.multi_reduction <add>, %22, %cst_7 [1] : vector<16x128xf32> to vector<16xf32>
    %24 = vector.shape_cast %23 : vector<16xf32> to vector<16x1xf32>
    %25 = math.log %24 : vector<16x1xf32>
    %26 = vector.broadcast %25 : vector<16x1xf32> to vector<16x128xf32>
    %27 = arith.subf %21, %26 : vector<16x128xf32>
    %28 = vector.broadcast %24 : vector<16x1xf32> to vector<16x128xf32>
    %29 = arith.divf %22, %28 : vector<16x128xf32>
    %c0_8 = arith.constant 0 : index
    %c0_9 = arith.constant 0 : index
    %30 = vector.load %arg3[%c0_8, %c0_9] : memref<16x1xi32, #tpu.memory_space<vmem>>, vector<16x1xi32>
    %c0_10 = arith.constant 0 : index
    %c0_11 = arith.constant 0 : index
    %31 = vector.load %arg4[%c0_10, %c0_11] : memref<16x1xf32, #tpu.memory_space<vmem>>, vector<16x1xf32>
    %32 = tpu.iota {dimensions = array<i32: 1>} : vector<16x128xi32>
    %33 = vector.broadcast %30 : vector<16x1xi32> to vector<16x128xi32>
    %34 = arith.cmpi eq, %32, %33 : vector<16x128xi32>
    %35 = arith.extui %34 : vector<16x128xi1> to vector<16x128xi32>
    %36 = arith.sitofp %35 : vector<16x128xi32> to vector<16x128xf32>
    %37 = arith.mulf %16, %36 : vector<16x128xf32>
    %cst_12 = arith.constant dense<0.000000e+00> : vector<16xf32>
    %38 = vector.multi_reduction <add>, %37, %cst_12 [1] : vector<16x128xf32> to vector<16xf32>
    %39 = vector.shape_cast %38 : vector<16xf32> to vector<16x1xf32>
    %cst_13 = arith.constant 0.000000e+00 : f32
    %40 = vector.broadcast %cst_13 : f32 to vector<16x1xf32>
    %41 = arith.subf %40, %39 : vector<16x1xf32>
    %cst_14 = arith.constant 0.000000e+00 : f32
    %42 = vector.broadcast %cst_14 : f32 to vector<16x1xf32>
    %43 = arith.cmpf one, %31, %42 : vector<16x1xf32>
    %44 = arith.extui %43 : vector<16x1xi1> to vector<16x1xi32>
    %45 = arith.sitofp %44 : vector<16x1xi32> to vector<16x1xf32>
    %46 = arith.subf %27, %16 : vector<16x128xf32>
    %47 = arith.mulf %29, %46 : vector<16x128xf32>
    %cst_15 = arith.constant dense<0.000000e+00> : vector<16xf32>
    %48 = vector.multi_reduction <add>, %47, %cst_15 [1] : vector<16x128xf32> to vector<16xf32>
    %49 = vector.shape_cast %48 : vector<16xf32> to vector<16x1xf32>
    %c0_16 = arith.constant 0 : index
    %50 = memref.load %arg6[%c0_16] : memref<4xf32, #tpu.memory_space<smem>>
    %51 = arith.mulf %41, %31 : vector<16x1xf32>
    %52 = vector.shape_cast %51 : vector<16x1xf32> to vector<1x16x1xf32>
    %cst_17 = arith.constant dense<0.000000e+00> : vector<1xf32>
    %53 = vector.multi_reduction <add>, %52, %cst_17 [1, 2] : vector<1x16x1xf32> to vector<1xf32>
    %54 = vector.shape_cast %53 : vector<1xf32> to vector<1x1x1xf32>
    %55 = vector.extract %54[0, 0, 0] : f32 from vector<1x1x1xf32>
    %56 = arith.addf %50, %55 : f32
    %c0_18 = arith.constant 0 : index
    %57 = memref.load %arg6[%c0_18] : memref<4xf32, #tpu.memory_space<smem>>
    memref.store %56, %arg6[%c0_18] : memref<4xf32, #tpu.memory_space<smem>>
    %c1 = arith.constant 1 : index
    %58 = memref.load %arg6[%c1] : memref<4xf32, #tpu.memory_space<smem>>
    %59 = vector.shape_cast %31 : vector<16x1xf32> to vector<1x16x1xf32>
    %cst_19 = arith.constant dense<0.000000e+00> : vector<1xf32>
    %60 = vector.multi_reduction <add>, %59, %cst_19 [1, 2] : vector<1x16x1xf32> to vector<1xf32>
    %61 = vector.shape_cast %60 : vector<1xf32> to vector<1x1x1xf32>
    %62 = vector.extract %61[0, 0, 0] : f32 from vector<1x1x1xf32>
    %63 = arith.addf %58, %62 : f32
    %c1_20 = arith.constant 1 : index
    %64 = memref.load %arg6[%c1_20] : memref<4xf32, #tpu.memory_space<smem>>
    memref.store %63, %arg6[%c1_20] : memref<4xf32, #tpu.memory_space<smem>>
    %c2 = arith.constant 2 : index
    %65 = memref.load %arg6[%c2] : memref<4xf32, #tpu.memory_space<smem>>
    %66 = arith.mulf %49, %45 : vector<16x1xf32>
    %67 = vector.shape_cast %66 : vector<16x1xf32> to vector<1x16x1xf32>
    %cst_21 = arith.constant dense<0.000000e+00> : vector<1xf32>
    %68 = vector.multi_reduction <add>, %67, %cst_21 [1, 2] : vector<1x16x1xf32> to vector<1xf32>
    %69 = vector.shape_cast %68 : vector<1xf32> to vector<1x1x1xf32>
    %70 = vector.extract %69[0, 0, 0] : f32 from vector<1x1x1xf32>
    %71 = arith.addf %65, %70 : f32
    %c2_22 = arith.constant 2 : index
    %72 = memref.load %arg6[%c2_22] : memref<4xf32, #tpu.memory_space<smem>>
    memref.store %71, %arg6[%c2_22] : memref<4xf32, #tpu.memory_space<smem>>
    %c3 = arith.constant 3 : index
    %73 = memref.load %arg6[%c3] : memref<4xf32, #tpu.memory_space<smem>>
    %74 = vector.shape_cast %45 : vector<16x1xf32> to vector<1x16x1xf32>
    %cst_23 = arith.constant dense<0.000000e+00> : vector<1xf32>
    %75 = vector.multi_reduction <add>, %74, %cst_23 [1, 2] : vector<1x16x1xf32> to vector<1xf32>
    %76 = vector.shape_cast %75 : vector<1xf32> to vector<1x1x1xf32>
    %77 = vector.extract %76[0, 0, 0] : f32 from vector<1x1x1xf32>
    %78 = arith.addf %73, %77 : f32
    %c3_24 = arith.constant 3 : index
    %79 = memref.load %arg6[%c3_24] : memref<4xf32, #tpu.memory_space<smem>>
    memref.store %78, %arg6[%c3_24] : memref<4xf32, #tpu.memory_space<smem>>
    %c1_i32 = arith.constant 1 : i32
    %80 = arith.cmpi eq, %arg0, %c1_i32 : i32
    %81 = arith.extui %80 : i1 to i32
    %c0_i32_25 = arith.constant 0 : i32
    %82 = arith.cmpi ne, %81, %c0_i32_25 : i32
    scf.if %82 {
      %c0_26 = arith.constant 0 : index
      %83 = memref.load %arg6[%c0_26] : memref<4xf32, #tpu.memory_space<smem>>
      %c0_27 = arith.constant 0 : index
      %84 = memref.load %arg5[%c0_27] : memref<4xf32, #tpu.memory_space<smem>>
      memref.store %83, %arg5[%c0_27] : memref<4xf32, #tpu.memory_space<smem>>
      %c1_28 = arith.constant 1 : index
      %85 = memref.load %arg6[%c1_28] : memref<4xf32, #tpu.memory_space<smem>>
      %c1_29 = arith.constant 1 : index
      %86 = memref.load %arg5[%c1_29] : memref<4xf32, #tpu.memory_space<smem>>
      memref.store %85, %arg5[%c1_29] : memref<4xf32, #tpu.memory_space<smem>>
      %c2_30 = arith.constant 2 : index
      %87 = memref.load %arg6[%c2_30] : memref<4xf32, #tpu.memory_space<smem>>
      %c2_31 = arith.constant 2 : index
      %88 = memref.load %arg5[%c2_31] : memref<4xf32, #tpu.memory_space<smem>>
      memref.store %87, %arg5[%c2_31] : memref<4xf32, #tpu.memory_space<smem>>
      %c3_32 = arith.constant 3 : index
      %89 = memref.load %arg6[%c3_32] : memref<4xf32, #tpu.memory_space<smem>>
      %c3_33 = arith.constant 3 : index
      %90 = memref.load %arg5[%c3_33] : memref<4xf32, #tpu.memory_space<smem>>
      memref.store %89, %arg5[%c3_33] : memref<4xf32, #tpu.memory_space<smem>>
    } else {
    }
    return
  }
  func.func @transform_0(%arg0: i32) -> (i32, i32) {
    %c0_i32 = arith.constant 0 : i32
    %c0_i32_0 = arith.constant 0 : i32
    return %arg0, %c0_i32 : i32, i32
  }
  func.func @transform_1(%arg0: i32) -> (i32, i32) {
    %c0_i32 = arith.constant 0 : i32
    %c0_i32_0 = arith.constant 0 : i32
    %c0_i32_1 = arith.constant 0 : i32
    return %c0_i32, %c0_i32_0 : i32, i32
  }
  func.func @transform_2(%arg0: i32) -> (i32, i32) {
    %c0_i32 = arith.constant 0 : i32
    %c0_i32_0 = arith.constant 0 : i32
    return %arg0, %c0_i32 : i32, i32
  }
  func.func @transform_3(%arg0: i32) -> (i32, i32) {
    %c0_i32 = arith.constant 0 : i32
    %c0_i32_0 = arith.constant 0 : i32
    return %arg0, %c0_i32 : i32, i32
  }
  func.func @transform_4(%arg0: i32) -> i32 {
    %c0_i32 = arith.constant 0 : i32
    %c0_i32_0 = arith.constant 0 : i32
    return %c0_i32 : i32
  }
}

</mosaic_0001>

<bundles_post_ra>
// kernel: tpu_custom_call.1
= control target key start
LH: loop header
LB: loop body
LE: loop exit
PB: predicated region body
PF: predicated region fallthrough
CT: control target
= control target key end

     0   :  { %9 = vsyncpa [#allocation4], 0  ;;  %s711_s15 = smov 0   ;;  %s796_s0 = inlined_call_operand.vmem [shape: bf16[32,32], index: 0, kind: input, shape index: {}]   ;;  %s797_s1 = inlined_call_operand.vmem [shape: bf16[32,256], index: 1, kind: input, shape index: {}]   ;;  %s798_s2 = inlined_call_operand.vmem [shape: s32[32,1], index: 2, kind: input, shape index: {}]   ;;  %s799_s3 = inlined_call_operand.vmem [shape: f32[32,1], index: 3, kind: input, shape index: {}]   ;;  %s800_s4 = inlined_call_operand.hbm [shape: f32[4], index: 4, kind: output, shape index: {}]  }
   0x1 LB: > { %s717_s16 = sadd.s32 4294967295, %s680_s15   ;;  %p562_p0 = scmp.ge.s32.totalorder %s680_s15, 1  ;;  %s680_s15 = sphi %s711_s15, %s15_s15  }
   0x2   : > { %p181_p1 = scmp.lt.s32.totalorder %s680_s15, 3 }
   0x4   : > { %p182_p2 = pnand %p562_p0, %p181_p1 }
   0x5   : > { %v631_v0 = vld [vmem:[%s797_s1 + $0x4] ss:$8 sps:$4 sm:$0xff] (!%p182_p2)   ;;  %v633_v1 = vld [vmem:[%s797_s1] ss:$8 sps:$4 sm:$0xff] (!%p182_p2)   ;;  %v682_v2 = vmov (!%p182_p2), 0   ;;  %s563_s21 = sshll.u32 (!%p182_p2), %s717_s16, 1  ;;  %v369_v31 = vlaneseq (!%p182_p2) }
   0x6   : > { %185 = sbr.rel (%p182_p2) target bundleno = 922 (0x39a), region = 36  ;;  %310 = vmatprep.mubr.bf16.mxu0 (!%p182_p2), %v682_v2  ;;  %629 = vset.pattern.permute.xlu0 (!%p182_p2), %v682_v2  ;;  %v634_v3 = vld [vmem:[%s797_s1 + $0x14] ss:$8 sps:$4 sm:$0xff] (!%p182_p2)   ;;  %p213_p3 = scmp.lt.s32.totalorder (!%p182_p2), %s563_s21, 3  ;;  %v636_v4 = vld [vmem:[%s797_s1 + $0x10] ss:$8 sps:$4 sm:$0xff] (!%p182_p2)  }
   0x7   : > { %278 = vmatprep.subr.bf16.mxu0 (!%p182_p2), %v631_v0  ;;  %630 = vset.pattern.permute.xlu1 (!%p182_p2), %v682_v2  ;;  %vm274_vm0 = vcmask (!%p182_p2), 261120   ;;  %v370_v33 = vand.u32 (!%p182_p2), 127, %v369_v31  ;;  %v683_v38 = vmov (!%p182_p2), 0.0   ;;  %vm408_vm3 = vcmask (!%p182_p2), 7168   ;;  %p613_p4 = scmp.eq.s32.totalorder (!%p182_p2), %s717_s16, 0  ;;  %s684_s11 = smov (!%p182_p2), 0.0  }
   0x8   : > { %279 = vmatpush1.bf16.msra.mxu0 (!%p182_p2), %v633_v1  ;;  %p614_p5 = scmp.eq.s32.totalorder (!%p182_p2), %s717_s16, 1  ;;  %s658_s28 = scalar_lea.hbm (!%p182_p2), %s800_s4, 16 }
   0x9   : > { %280 = vmatprep.subr.bf16.mxu0 (!%p182_p2), %v634_v3  ;;  %p659_p6 = scmp.ne.s32.totalorder (!%p182_p2), %s800_s4, %s658_s28  ;;  %p664_p9 = scmp.lt.u32.totalorder (!%p182_p2), %s658_s28, %s800_s4 }
   0xb   : > { %p660_p7 = pnand (!%p182_p2), %p659_p6, %p614_p5 }
   0xc   : > { %281 = vmatpush1.bf16.msra.mxu0 (!%p182_p2), %v636_v4 }
   0xd   : > { %s802_s21 = smov (!%p213_p3, %s563_s21), 3  ;;  %600 = sst [smem:[#allocation2]] (%p613_p4), %s684_s11 }
   0xe   : > { %s564_s26 = sshll.u32 %s802_s21, 2  ;;  %s566_s30 = sshll.u32 %s802_s21, 3 }
   0xf   : > { %s216_s29 = scalar_lea.vmem %s796_s0, %s564_s26  ;;  %s222_s7 = scalar_lea.vmem %s798_s2, %s566_s30 }
  0x10   : > { %v637_v5 = vld [vmem:[%s216_s29] sm:$0xff]   ;;  %v366_v26 = vld [vmem:[%s222_s7 + $0x8] sm:$0xff]  ;;  %s228_s10 = scalar_lea.vmem %s799_s3, %s566_s30  ;;  %601 = sst [smem:[#allocation2 + $0x1]] (%p613_p4), %s684_s11 }
  0x11   : > { %575 = vmatmul.mubr.msk.bf16.vlgmr.msra.gmra.mrb[0].mxu0 %vm274_vm0, %v637_v5  ;;  %v365_v27 = vld [vmem:[%s222_s7] sm:$0xff]  ;;  %v368_v62 = vld [vmem:[%s228_s10 + $0x8] sm:$0xff]  ;;  %602 = sst [smem:[#allocation2 + $0x2]] (%p613_p4), %s684_s11  ;;  %s405_s12 = sld [smem:[#allocation2]] }
  0x12   : > { %v367_v61 = vld [vmem:[%s228_s10] sm:$0xff]  ;;  %v426_v0 = vsel %vm408_vm3, %v368_v62, 0.0  ;;  %vm392_vm5 = vcmp.ne.f32.partialorder %v368_v62, 0.0  ;;  %603 = sst [smem:[#allocation2 + $0x3]] (%p613_p4), %s684_s11  ;;  %s580_s13 = sld [smem:[#allocation2 + $0x1]] }
  0x13   : > { %v425_v63 = vsel %vm408_vm3, %v367_v61, 0.0  ;;  %vm391_vm4 = vcmp.ne.f32.partialorder %v367_v61, 0.0  ;;  %s581_s14 = sld [smem:[#allocation2 + $0x2]]  ;;  %s582_s18 = sld [smem:[#allocation2 + $0x3]] }
  0x14   : > { %v427_v1 = vadd.f32 %v426_v0, %v425_v63  ;;  %v578_v5 = vsel %vm391_vm4, 1.0, %v683_v38  ;;  %p661_p8 = pneg %p660_p7 }
  0x16   : > { %p666_p10 = pnand %p664_p9, %p661_p8 }
  0xe4   : > { %v312_v6 = vpop.f32.mrb[0].mxu0 }
  0xe5   : > { %321 = vmax.xlane.f32.xlu0 %v312_v6  ;;  %v314_v7 = vpop.f32.mrb[1].mxu0 }
  0xe6   : > { %341 = vmax.xlane.f32.xlu1 %v314_v7  ;;  %v316_v8 = vpop.f32.mrb[2].mxu0 }
  0xe7   : > { %v318_v9 = vpop.f32.mrb[3].mxu0 }
  0xe9   : > { %323 = vmax.xlane.f32.xlu0 %v316_v8 }
  0xea   : > { %343 = vmax.xlane.f32.xlu1 %v318_v9 }
 0x172   : > { %v322_v10 = vpop.xlane.xlu0 %321 }
 0x173   : > { %v325_v11 = vsub.f32 %v312_v6, %v322_v10  ;;  %v342_v12 = vpop.xlane.xlu1 %341 }
 0x174   : > { %v345_v13 = vsub.f32 %v314_v7, %v342_v12 }
 0x175   : > { %v327_v14 = vmul.f32 1.442695, %v325_v11 }
 0x176   : > { %v347_v15 = vmul.f32 1.442695, %v345_v13  ;;  %v324_v16 = vpop.xlane.xlu0 %323 }
 0x177   : > { %638 = vpow2.f32 %v327_v14  ;;  %v326_v17 = vsub.f32 %v316_v8, %v324_v16  ;;  %v344_v18 = vpop.xlane.xlu1 %343 }
 0x178   : > { %v740_v19 = vsub.f32 %v318_v9, %v344_v18  ;;  %640 = vpow2.f32 %v347_v15  ;;  %v579_v9 = vsel %vm392_vm5, 1.0, %v683_v38 }
 0x179   : > { %v329_v20 = vmul.f32 1.442695, %v326_v17 }
 0x17a   : > { %v349_v21 = vmul.f32 1.442695, %v740_v19 }
 0x17b   : > { %642 = vpow2.f32 %v329_v20  ;;  %v459_v20 = vsel %vm408_vm3, %v578_v5, 0.0 }
 0x17c   : > { %644 = vpow2.f32 %v349_v21  ;;  %v460_v21 = vsel %vm408_vm3, %v579_v9, 0.0 }
 0x181   : > { %v639_v22 = vpop.eup %638 }
 0x182   : > { %331 = vadd.xlane.f32.xlu0 %v639_v22  ;;  %v641_v23 = vpop.eup %640  ;;  %v461_v22 = vadd.f32 %v460_v21, %v459_v20 }
 0x185   : > { %v643_v24 = vpop.eup %642 }
 0x186   : > { %351 = vadd.xlane.f32.xlu0 %v641_v23  ;;  %333 = vadd.xlane.f32.xlu1 %v643_v24  ;;  %v645_v25 = vpop.eup %644 }
 0x18a   : > { %353 = vadd.xlane.f32.xlu1 %v645_v25 }
 0x19b   : > { %375 = vperm.xlu1 %630, %v366_v26  }
 0x19c   : > { %372 = vperm.xlu0 %629, %v365_v27  }
 0x20f   : > { %v332_v28 = vpop.xlane.xlu0 %331 }
 0x210   : > { %646 = vlog2.f32 %v332_v28 }
 0x213   : > { %v352_v29 = vpop.xlane.xlu0 %351  ;;  %v334_v30 = vpop.xlane.xlu1 %333 }
 0x214   : > { %648 = vlog2.f32 %v352_v29 }
 0x215   : > { %650 = vrcp.f32 %v352_v29 }
 0x216   : > { %652 = vlog2.f32 %v334_v30 }
 0x217   : > { %v354_v32 = vpop.xlane.xlu1 %353 }
 0x218   : > { %654 = vlog2.f32 %v354_v32 }
 0x219   : > { %656 = vrcp.f32 %v354_v32 }
 0x21a   : > { %v647_v34 = vpop.eup %646 }
 0x21b   : > { %v336_v35 = vmul.f32 0.6931472, %v647_v34  ;;  %v373_v36 = vpop.permute.xlu0 %372  ;;  %v376_v37 = vpop.permute.xlu1 %375 }
 0x21c   : > { %vm377_vm1 = vcmp.eq.s32.totalorder %v370_v33, %v373_v36  ;;  %vm378_vm2 = vcmp.eq.s32.totalorder %v370_v33, %v376_v37 }
 0x21d   : > { %v576_v39 = vsel %vm377_vm1, 1.0, %v683_v38  ;;  %v339_v40 = vsub.f32 %v325_v11, %v336_v35  ;;  %v577_v49 = vsel %vm378_vm2, 1.0, %v683_v38 }
 0x21e   : > { %v649_v41 = vpop.eup %648 }
 0x21f   : > { %v651_v42 = vpop.eup %650  ;;  %v356_v43 = vmul.f32 0.6931472, %v649_v41  ;;  %v383_v44 = vmul.f32 %v576_v39, %v339_v40 }
 0x220   : > { %v653_v45 = vpop.eup %652  ;;  %v362_v52 = vmul.f32 %v651_v42, %v641_v23 }
 0x221   : > { %v338_v46 = vmul.f32 0.6931472, %v653_v45  ;;  %385 = vadd.xlane.f32.xlu1 %v383_v44  ;;  %v359_v47 = vsub.f32 %v345_v13, %v356_v43 }
 0x222   : > { %v655_v48 = vpop.eup %654 }
 0x223   : > { %v358_v50 = vmul.f32 0.6931472, %v655_v48  ;;  %v340_v51 = vsub.f32 %v326_v17, %v338_v46  ;;  %v397_v53 = vsub.f32 %v359_v47, %v339_v40  ;;  %v657_v54 = vpop.eup %656 }
 0x224   : > { %v364_v58 = vmul.f32 %v657_v54, %v645_v25 }
 0x225   : > { %v384_v55 = vmul.f32 %v577_v49, %v340_v51  ;;  %v399_v56 = vmul.f32 %v397_v53, %v362_v52  ;;  %v360_v57 = vsub.f32 %v740_v19, %v358_v50 }
 0x227   : > { %387 = vadd.xlane.f32.xlu0 %v384_v55  ;;  %401 = vadd.xlane.f32.xlu1 %v399_v56  ;;  %v398_v59 = vsub.f32 %v360_v57, %v340_v51 }
 0x229   : > { %v400_v60 = vmul.f32 %v398_v59, %v364_v58 }
 0x22b   : > { %403 = vadd.xlane.f32.xlu1 %v400_v60 }
 0x22f   : > { %428 = vadd.xlane.f32.xlu1 %v427_v1 }
 0x2ae   : > { %v386_v2 = vpop.xlane.xlu1 %385 }
 0x2af   : > { %v389_v3 = vsub.f32 0.0, %v386_v2 }
 0x2b1   : > { %v406_v7 = vmul.f32 %v389_v3, %v367_v61 }
 0x2b3   : > { %v409_v14 = vsel %vm408_vm3, %v406_v7, 0.0 }
 0x2b4   : > { %v388_v4 = vpop.xlane.xlu0 %387  ;;  %v402_v6 = vpop.xlane.xlu1 %401 }
 0x2b5   : > { %v390_v8 = vsub.f32 0.0, %v388_v4  ;;  %v441_v11 = vmul.f32 %v578_v5, %v402_v6 }
 0x2b7   : > { %v407_v10 = vmul.f32 %v390_v8, %v368_v62  ;;  %v443_v17 = vsel %vm408_vm3, %v441_v11, 0.0 }
 0x2b8   : > { %v404_v12 = vpop.xlane.xlu1 %403 }
 0x2b9   : > { %v442_v13 = vmul.f32 %v579_v9, %v404_v12  ;;  %v410_v15 = vsel %vm408_vm3, %v407_v10, 0.0 }
 0x2ba   : > { %v411_v16 = vadd.f32 %v410_v15, %v409_v14 }
 0x2bb   : > { %v444_v18 = vsel %vm408_vm3, %v442_v13, 0.0 }
 0x2bc   : > { %412 = vadd.xlane.f32.xlu1 %v411_v16  ;;  %v445_v19 = vadd.f32 %v444_v18, %v443_v17  ;;  %v429_v23 = vpop.xlane.xlu1 %428 }
 0x2bd   : > { %v430_v24 = vrot.slane %v429_v23, 4 }
 0x2bf   : > { %v431_v25 = vadd.f32 %v430_v24, %v429_v23 }
 0x2c0   : > { %446 = vadd.xlane.f32.xlu1 %v445_v19 }
 0x2c1   : > { %v432_v26 = vrot.slane %v431_v25, 2 }
 0x2c3   : > { %v433_v31 = vadd.f32 %v432_v26, %v431_v25 }
 0x2c4   : > { %462 = vadd.xlane.f32.xlu1 %v461_v22 }
 0x2c5   : > { %v434_v37 = vrot.slane %v433_v31, 1 }
 0x2c7   : > { %v435_v44 = vadd.f32 %v434_v37, %v433_v31 }
 0x349   : > { %v413_v27 = vpop.xlane.xlu1 %412 }
 0x34a   : > { %v414_v28 = vrot.slane %v413_v27, 4 }
 0x34c   : > { %v415_v29 = vadd.f32 %v414_v28, %v413_v27 }
 0x34d   : > { %v447_v30 = vpop.xlane.xlu1 %446 }
 0x34e   : > { %v416_v32 = vrot.slane %v415_v29, 2  ;;  %v448_v33 = vrot.slane %v447_v30, 4 }
 0x350   : > { %v449_v34 = vadd.f32 %v448_v33, %v447_v30  ;;  %v417_v35 = vadd.f32 %v416_v32, %v415_v29 }
 0x351   : > { %v463_v36 = vpop.xlane.xlu1 %462 }
 0x352   : > { %v450_v38 = vrot.slane %v449_v34, 2  ;;  %v464_v39 = vrot.slane %v463_v36, 4  ;;  %v418_v40 = vrot.slane %v417_v35, 1 }
 0x354   : > { %v465_v41 = vadd.f32 %v464_v39, %v463_v36  ;;  %v419_v42 = vadd.f32 %v418_v40, %v417_v35  ;;  %v451_v43 = vadd.f32 %v450_v38, %v449_v34 }
 0x356   : > { %v466_v45 = vrot.slane %v465_v41, 2  ;;  %591 = vpush %v419_v42  ;;  %v452_v46 = vrot.slane %v451_v43, 1 }
 0x357   : > { %593 = vpush %v435_v44 }
 0x358   : > { %v467_v47 = vadd.f32 %v466_v45, %v465_v41  ;;  %v453_v48 = vadd.f32 %v452_v46, %v451_v43 }
 0x35a   : > { %595 = vpush %v453_v48  ;;  %v468_v49 = vrot.slane %v467_v47, 1 }
 0x35c   : > { %v469_v50 = vadd.f32 %v468_v49, %v467_v47 }
 0x35e   : > { %597 = vpush %v469_v50 }
 0x387   : > { %s592_s17 = spop %591 }
 0x388   : > { %s421_s19 = sadd.f32 %s592_s17, %s405_s12  ;;  %s594_s20 = spop %593 }
 0x389   : > { %s437_s21 = sadd.f32 %s594_s20, %s580_s13 }
 0x38a   : > { %423 = sst [smem:[#allocation2]] %s421_s19 }
 0x38b   : > { %439 = sst [smem:[#allocation2 + $0x1]] %s437_s21  ;;  %s596_s22 = spop %595 }
 0x38c   : > { %s455_s23 = sadd.f32 %s596_s22, %s581_s14 }
 0x38d   : > { %605 = sst [smem:[#allocation3]] (%p614_p5), %s421_s19 }
 0x38e   : > { %457 = sst [smem:[#allocation2 + $0x2]] %s455_s23 }
 0x38f   : > { %s598_s24 = spop %597  ;;  %606 = sst [smem:[#allocation3 + $0x1]] (%p614_p5), %s437_s21 }
 0x390   : > { %s471_s25 = sadd.f32 %s598_s24, %s582_s18 }
 0x391   : > { %607 = sst [smem:[#allocation3 + $0x2]] (%p614_p5), %s455_s23 }
 0x392   : > { %473 = sst [smem:[#allocation2 + $0x3]] %s471_s25 }
 0x393   : > { %608 = sst [smem:[#allocation3 + $0x3]] (%p614_p5), %s471_s25 }
 0x394   : > { %669 = shalt.err (!%p666_p10)
}
 0x395   : > { %s685_s7 = smov [#allocation3]  }
 0x396   : > { %610 = dma.smem_to_hbm (%p614_p5), %s685_s7, 16, %s800_s4, [#allocation4]  }
 0x397   : > { %675 = dma.done.wait (%p614_p5), [#allocation4], 16  }
 0x398   : > { %677 = vsyncadd (%p614_p5), [#allocation4], 4294967280 }
 0x399   : > { %503 = sfence }
 0x39a PF: > { %s15_s15 = sadd.s32 1, %s680_s15  }
 0x39b   : > { %p12_p11 = scmp.ge.s32.totalorder %s15_s15, 4  }
 0x39d   :  { %14 = sbr.rel (!%p12_p11) target bundleno = 1 (0x1), region = 89 }
 0x3a4   :  { %509 = vsyncpa [#allocation4], 1 }
 0x3a5   :  { %511 = vsyncpa [#allocation4 + $0x1], 1 }

</bundles_post_ra>
